<compile_context>
chip_gen: v7x
topology: tpu7x:2x2x1
jax: 0.10.0
libtpu: 0.0.40
codegen_flags: <defaults>
</compile_context>

<pallas_src>
import jax
import jax.numpy as jnp
from jax.experimental import pallas as pl
from jax.experimental.pallas import tpu as pltpu


def _round_up(x, m):
    return (x + m - 1) // m * m


def _tpu_kind():
    try:
        return jax.devices()[0].device_kind.lower()
    except Exception:
        return ""


def _hw_params():
    """Returns (vmem_limit_bytes, fallback_tile) — generation aware, conservative."""
    kind = _tpu_kind()
    if "v6" in kind:
        return 96 * 2**20, 1024        # 128 MiB physical VMEM, ridge ~650 flop/B
    if "v5" in kind:
        return 96 * 2**20, 512         # 128 MiB physical VMEM, ridge ~240 flop/B
    if "v2" in kind or "v3" in kind or "v4" in kind:
        return 32 * 2**20, 512         # stay inside scoped defaults on older gens
    # v7x (64 MiB / TensorCore) or unknown: conservative budget.
    return 48 * 2**20, 768


# --------------------------------------------------------------------------- #
# Kernels
# --------------------------------------------------------------------------- #
def _dot_bias_kernel(x_ref, w_ref, b_ref, o_ref):
    # Single-shot GEMM epilogue: no accumulator scratch, direct store.
    o_ref[...] = (
        jnp.dot(x_ref[...], w_ref[...], preferred_element_type=jnp.float32)
        + b_ref[...]
    ).astype(o_ref.dtype)


def _dot_bias_acc_kernel(x_ref, w_ref, b_ref, o_ref, acc_ref):
    # K-tiled reduction with f32 VMEM accumulator (P3 init/finalize).
    k = pl.program_id(2)

    @pl.when(k == 0)
    def _():
        acc_ref[...] = jnp.zeros_like(acc_ref)

    acc_ref[...] += jnp.dot(
        x_ref[...], w_ref[...], preferred_element_type=jnp.float32
    )

    @pl.when(k == pl.num_programs(2) - 1)
    def _():
        o_ref[...] = (acc_ref[...] + b_ref[...]).astype(o_ref.dtype)


# --------------------------------------------------------------------------- #
# Wrapper
# --------------------------------------------------------------------------- #
def linear_upsample(hidden_states, weight, bias, *, scale,
                    compute_dtype=jnp.bfloat16):
    """hidden_states: (B, T, H); weight: (H, H*scale); bias: (H*scale,).

    Returns (B, T*scale, H) in hidden_states.dtype.  The matmul runs on the MXU
    in `compute_dtype` (bf16 by default) with f32 accumulation and f32 bias add.
    """
    B, T, H = hidden_states.shape
    K, N = weight.shape
    assert K == H and N == H * scale, (weight.shape, H, scale)

    out_dtype = hidden_states.dtype
    out_bytes = jnp.dtype(out_dtype).itemsize
    c_bytes = jnp.dtype(compute_dtype).itemsize
    M = B * T
    sublane = 16 if c_bytes == 2 else 8

    vmem_limit, fb_tile = _hw_params()
    resident_budget = int(vmem_limit * 0.85)

    x2d = hidden_states.reshape(M, H)
    if x2d.dtype != compute_dtype:
        x2d = x2d.astype(compute_dtype)
    w2d = weight if weight.dtype == compute_dtype else weight.astype(compute_dtype)
    b2d = bias if bias.dtype == jnp.float32 else bias.astype(jnp.float32)
    b2d = b2d.reshape(1, N)

    w_bytes = K * N * c_bytes

    def _resident_vmem(tm_):
        # weight (counted twice: pipeline buffer allocation) + x/out double
        # buffers + bias.
        return (2 * w_bytes
                + 2 * tm_ * K * c_bytes
                + 2 * tm_ * N * out_bytes
                + 2 * N * 4)

    tm = min(512, _round_up(M, sublane))
    while _resident_vmem(tm) > resident_budget and tm > sublane:
        tm = max(sublane, _round_up(tm // 2, sublane))

    if _resident_vmem(tm) <= resident_budget:
        # ---------------- Weight-resident path ---------------- #
        M_pad = _round_up(M, tm)
        if M_pad != M:
            x2d = jnp.pad(x2d, ((0, M_pad - M), (0, 0)))

        out2d = pl.pallas_call(
            _dot_bias_kernel,
            out_shape=jax.ShapeDtypeStruct((M_pad, N), out_dtype),
            grid_spec=pltpu.PrefetchScalarGridSpec(
                num_scalar_prefetch=0,
                grid=(M_pad // tm,),
                in_specs=[
                    pl.BlockSpec((tm, K), lambda i: (i, 0)),
                    # Constant block index → weight DMA'd from HBM exactly once.
                    pl.BlockSpec((K, N), lambda i: (0, 0)),
                    pl.BlockSpec((1, N), lambda i: (0, 0)),
                ],
                out_specs=pl.BlockSpec((tm, N), lambda i: (i, 0)),
            ),
            compiler_params=pltpu.CompilerParams(
                dimension_semantics=("parallel",),
                vmem_limit_bytes=vmem_limit,
            ),
        )(x2d, w2d, b2d)

        if M_pad != M:
            out2d = out2d[:M]
    else:
        # ---------------- Fallback tiled path ---------------- #
        tm = min(fb_tile, _round_up(M, sublane))
        tn = min(fb_tile, _round_up(N, 128))
        tk = min(1024, _round_up(K, 128))
        M_pad = _round_up(M, tm)
        N_pad = _round_up(N, tn)
        K_pad = _round_up(K, tk)

        if (M_pad, K_pad) != (M, K):
            x2d = jnp.pad(x2d, ((0, M_pad - M), (0, K_pad - K)))
        if (K_pad, N_pad) != (K, N):
            w2d = jnp.pad(w2d, ((0, K_pad - K), (0, N_pad - N)))
        if N_pad != N:
            b2d = jnp.pad(b2d, ((0, 0), (0, N_pad - N)))

        nm, nn, nk = M_pad // tm, N_pad // tn, K_pad // tk

        if nk == 1:
            # Single K step: skip the accumulator scratch entirely.
            out2d = pl.pallas_call(
                _dot_bias_kernel,
                out_shape=jax.ShapeDtypeStruct((M_pad, N_pad), out_dtype),
                grid_spec=pltpu.PrefetchScalarGridSpec(
                    num_scalar_prefetch=0,
                    grid=(nm, nn),
                    in_specs=[
                        pl.BlockSpec((tm, tk), lambda i, j: (i, 0)),
                        pl.BlockSpec((tk, tn), lambda i, j: (0, j)),
                        pl.BlockSpec((1, tn), lambda i, j: (0, j)),
                    ],
                    out_specs=pl.BlockSpec((tm, tn), lambda i, j: (i, j)),
                ),
                compiler_params=pltpu.CompilerParams(
                    dimension_semantics=("parallel", "parallel"),
                    vmem_limit_bytes=vmem_limit,
                ),
            )(x2d, w2d, b2d)
        else:
            out2d = pl.pallas_call(
                _dot_bias_acc_kernel,
                out_shape=jax.ShapeDtypeStruct((M_pad, N_pad), out_dtype),
                grid_spec=pltpu.PrefetchScalarGridSpec(
                    num_scalar_prefetch=0,
                    grid=(nm, nn, nk),
                    in_specs=[
                        pl.BlockSpec((tm, tk), lambda i, j, k: (i, k)),
                        pl.BlockSpec((tk, tn), lambda i, j, k: (k, j)),
                        pl.BlockSpec((1, tn), lambda i, j, k: (0, j)),
                    ],
                    out_specs=pl.BlockSpec((tm, tn), lambda i, j, k: (i, j)),
                    scratch_shapes=[pltpu.VMEM((tm, tn), jnp.float32)],
                ),
                compiler_params=pltpu.CompilerParams(
                    dimension_semantics=("parallel", "parallel", "arbitrary"),
                    vmem_limit_bytes=vmem_limit,
                ),
            )(x2d, w2d, b2d)

        if (M_pad, N_pad) != (M, N):
            out2d = out2d[:M, :N]

    # (B*T, H*scale) -> (B, T, scale, H) -> (B, T*scale, H)
    return out2d.reshape(B, T, scale, H).reshape(B, T * scale, H)


# --------------------------------------------------------------------------- #
# Module wrapper & reference
# --------------------------------------------------------------------------- #
class UpsamplePallas:
    """Mirror of the PyTorch `Upsample` wrapper for upsample_type='linear'."""

    def __init__(self, hidden_size, scale, key, compute_dtype=jnp.bfloat16):
        self.hidden_size = hidden_size
        self.scale = scale
        self.compute_dtype = compute_dtype
        k_w, k_b = jax.random.split(key)
        # Deterministic synthetic init (nn.Linear shapes: out=H*scale, in=H).
        # NOTE: real PyTorch checkpoints store weight as (H*scale, H) — transpose
        # them when loading.
        bound = 1.0 / (hidden_size ** 0.5)
        self.weight = jax.random.uniform(
            k_w, (hidden_size, hidden_size * scale), jnp.float32, -bound, bound
        )
        self.bias = jax.random.uniform(
            k_b, (hidden_size * scale,), jnp.float32, -bound, bound
        )
        # Pre-cast ONCE (review item): no per-forward f32-weight HBM round trip.
        self.weight_c = self.weight.astype(compute_dtype)
        self.bias_f32 = self.bias.astype(jnp.float32)

    def __call__(self, hidden_states):
        return linear_upsample(
            hidden_states, self.weight_c, self.bias_f32,
            scale=self.scale, compute_dtype=self.compute_dtype,
        )


def _reference(hidden_states, weight, bias, scale, compute_dtype=jnp.bfloat16):
    # Same numerics as the kernel: bf16 operands, f32 accumulation, f32 bias add.
    B, T, H = hidden_states.shape
    x = hidden_states.astype(compute_dtype)
    w = weight.astype(compute_dtype)
    y = jnp.einsum("bth,hn->btn", x, w, preferred_element_type=jnp.float32)
    y = (y + bias.astype(jnp.float32)).astype(hidden_states.dtype)
    return y.reshape(B, T, scale, H).reshape(B, T * scale, H)


if __name__ == "__main__":
    key = jax.random.PRNGKey(0)
    k_x, k_x2, k_p = jax.random.split(key, 3)

    B, T, H = 2, 8, 32
    SCALE = 2  # sequence-length upsample factor

    module = UpsamplePallas(hidden_size=H, scale=SCALE, key=k_p)

    # Test 1: aligned shapes (no padding path).
    x = jax.random.normal(k_x, (B, T, H), jnp.float32)
    out = jax.block_until_ready(module(x))
    ref = _reference(x, module.weight, module.bias, SCALE)
    assert out.shape == (B, T * SCALE, H), out.shape
    assert jnp.allclose(out, ref, atol=1e-2, rtol=1e-2), "mismatch vs reference"

    # Test 2: unaligned row count (exercises the M-padding + slice path).
    T2 = 9
    x2 = jax.random.normal(k_x2, (B, T2, H), jnp.float32)
    out2 = jax.block_until_ready(module(x2))
    ref2 = _reference(x2, module.weight, module.bias, SCALE)
    assert out2.shape == (B, T2 * SCALE, H), out2.shape
    assert jnp.allclose(out2, ref2, atol=1e-2, rtol=1e-2), "mismatch vs reference (padded M)"

    print("KERNEL_OK")
</pallas_src>

<mosaic_0001>
module attributes {stable_mosaic.version = 11 : i64} {
  func.func @_dot_bias_kernel(%arg0: i32, %arg1: memref<16x32xbf16, #tpu.memory_space<vmem>>, %arg2: memref<32x64xbf16, #tpu.memory_space<vmem>>, %arg3: memref<1x64xf32, #tpu.memory_space<vmem>>, %arg4: memref<16x64xf32, #tpu.memory_space<vmem>>) attributes {dimension_semantics = [#tpu.dimension_semantics<parallel>], iteration_bounds = array<i64: 1>, scalar_prefetch = 0 : i64, scratch_operands = 0 : i64, tpu.core_type = #tpu.core_type<tc>, window_params = [{transform_indices = @transform_0, window_bounds = array<i64: 16, 32>}, {pipeline_mode = #tpu.pipeline_mode<synchronous>, transform_indices = @transform_1, window_bounds = array<i64: 32, 64>}, {pipeline_mode = #tpu.pipeline_mode<synchronous>, transform_indices = @transform_2, window_bounds = array<i64: 1, 64>}, {transform_indices = @transform_3, window_bounds = array<i64: 16, 64>}]} {
    %c0 = arith.constant 0 : index
    %c0_0 = arith.constant 0 : index
    %0 = vector.load %arg1[%c0, %c0_0] : memref<16x32xbf16, #tpu.memory_space<vmem>>, vector<16x32xbf16>
    %c0_1 = arith.constant 0 : index
    %c0_2 = arith.constant 0 : index
    %1 = vector.load %arg2[%c0_1, %c0_2] : memref<32x64xbf16, #tpu.memory_space<vmem>>, vector<32x64xbf16>
    %cst = arith.constant dense<0.000000e+00> : vector<16x64xf32>
    %2 = tpu.matmul %0, %1, %cst {dimension_numbers = #tpu.dot_dimension_numbers<[1], [0], [0], [1], [0, 0, 1, 1], [], []>} : vector<16x32xbf16>, vector<32x64xbf16>, vector<16x64xf32> -> vector<16x64xf32>
    %c0_3 = arith.constant 0 : index
    %c0_4 = arith.constant 0 : index
    %3 = vector.load %arg3[%c0_3, %c0_4] : memref<1x64xf32, #tpu.memory_space<vmem>>, vector<1x64xf32>
    %4 = vector.broadcast %3 : vector<1x64xf32> to vector<16x64xf32>
    %5 = arith.addf %2, %4 : vector<16x64xf32>
    %c0_5 = arith.constant 0 : index
    %c0_6 = arith.constant 0 : index
    %6 = vector.load %arg4[%c0_5, %c0_6] : memref<16x64xf32, #tpu.memory_space<vmem>>, vector<16x64xf32>
    tpu.vector_store %arg4[%c0_5, %c0_6], %5 {strides = array<i32>} : memref<16x64xf32, #tpu.memory_space<vmem>>, vector<16x64xf32>,
    return
  }
  func.func @transform_0(%arg0: i32) -> (i32, i32) {
    %c0_i32 = arith.constant 0 : i32
    %c0_i32_0 = arith.constant 0 : i32
    return %arg0, %c0_i32 : i32, i32
  }
  func.func @transform_1(%arg0: i32) -> (i32, i32) {
    %c0_i32 = arith.constant 0 : i32
    %c0_i32_0 = arith.constant 0 : i32
    %c0_i32_1 = arith.constant 0 : i32
    return %c0_i32, %c0_i32_0 : i32, i32
  }
  func.func @transform_2(%arg0: i32) -> (i32, i32) {
    %c0_i32 = arith.constant 0 : i32
    %c0_i32_0 = arith.constant 0 : i32
    %c0_i32_1 = arith.constant 0 : i32
    return %c0_i32, %c0_i32_0 : i32, i32
  }
  func.func @transform_3(%arg0: i32) -> (i32, i32) {
    %c0_i32 = arith.constant 0 : i32
    %c0_i32_0 = arith.constant 0 : i32
    return %arg0, %c0_i32 : i32, i32
  }
}

</mosaic_0001>

<bundles_post_ra>
// kernel: tpu_custom_call.1
= control target key start
LH: loop header
LB: loop body
LE: loop exit
PB: predicated region body
PF: predicated region fallthrough
CT: control target
= control target key end

     0   :  { %8 = vsyncpa [#allocation3], 0  ;;  %s308_s0 = inlined_call_operand.hbm [shape: bf16[16,32], index: 0, kind: input, shape index: {}]   ;;  %s309_s1 = inlined_call_operand.hbm [shape: bf16[32,64], index: 1, kind: input, shape index: {}]   ;;  %s310_s2 = inlined_call_operand.vmem [shape: f32[1,64], index: 2, kind: input, shape index: {}]   ;;  %s311_s3 = inlined_call_operand.hbm [shape: f32[16,64], index: 3, kind: output, shape index: {}]  }
   0x1   :  { %9 = vsyncpa [#allocation6], 0 }
   0x2   :  { %10 = vsyncpa [#allocation4], 0  ;;  %s240_s12 = smov [#allocation2]   ;;  %s168_s16 = scalar_lea.hbm %s308_s0, 128 }
   0x3   :  { %s16_s13 = sshll.u32 %s240_s12, 4  ;;  %p169_p0 = scmp.ne.s32.totalorder %s308_s0, %s168_s16  ;;  %s17_s13 = int_to_ptr.vmem [resolvable:$true] %s16_s13 }
   0x4   :  { %p172_p1 = scmp.lt.u32.totalorder %s168_s16, %s308_s0 }
   0x6   :  { %p174_p2 = pnand %p172_p1, %p169_p0 }
   0x8   :  { %177 = shalt.err (!%p174_p2)
}
   0x9   :  { %s178_s21 = scalar_lea.vmem %s17_s13, 128  ;;  %p183_p4 = scmp.lt.s32.totalorder %s17_s13, %s17_s13 }
   0xa   :  { %p179_p3 = scmp.ne.s32.totalorder %s17_s13, %s178_s21  ;;  %p184_p5 = scmp.lt.s32.totalorder %s178_s21, %s178_s21 }
   0xc   :  { %p185_p6 = por %p184_p5, %p183_p4 }
   0xe   :  { %p186_p7 = pnand %p185_p6, %p179_p3 }
  0x10   :  { %189 = shalt.err (!%p186_p7)
}
  0x11   :  { %s241_s22 = smov 64   ;;  %s242_s23 = smov 4  }
  0x12   :  { %22 = dma.hbm_to_vmem [thread:$0]  %s308_s0, 128, %s17_s13, [#allocation3], %s241_s22, %s241_s22, %s242_s23  }
  0x13   :  { %s243_s26 = smov [#allocation5]   ;;  %s190_s30 = scalar_lea.hbm %s309_s1, 256 }
  0x14   :  { %s28_s27 = sshll.u32 %s243_s26, 4  ;;  %p191_p8 = scmp.ne.s32.totalorder %s309_s1, %s190_s30  ;;  %s29_s27 = int_to_ptr.vmem [resolvable:$true] %s28_s27 }
  0x15   :  { %p194_p9 = scmp.lt.u32.totalorder %s190_s30, %s309_s1 }
  0x17   :  { %p196_p10 = pnand %p194_p9, %p191_p8 }
  0x19   :  { %199 = shalt.err (!%p196_p10)
}
  0x1a   :  { %s200_s8 = scalar_lea.vmem %s29_s27, 256  ;;  %p205_p12 = scmp.lt.s32.totalorder %s29_s27, %s29_s27 }
  0x1b   :  { %p201_p11 = scmp.ne.s32.totalorder %s29_s27, %s200_s8  ;;  %p206_p13 = scmp.lt.s32.totalorder %s200_s8, %s200_s8 }
  0x1d   :  { %p207_p0 = por %p206_p13, %p205_p12 }
  0x1f   :  { %p208_p1 = pnand %p207_p0, %p201_p11 }
  0x21   :  { %211 = shalt.err (!%p208_p1)
}
  0x22   :  { %34 = dma.hbm_to_vmem [thread:$0]  %s309_s1, 256, %s29_s27, [#allocation6], %s241_s22, %s241_s22, %s242_s23  }
  0x23   :  { %234 = dma.done.wait [#allocation3], 128  }
  0x24   :  { %235 = vsyncadd [#allocation3], 4294967168 }
  0x25   :  { %236 = dma.done.wait [#allocation6], 256  }
  0x26   :  { %237 = vsyncadd [#allocation6], 4294967040  ;;  %v244_v0 = vmov 0.0   ;;  %vm245_vm0 = vmmov 0   ;;  %v165_v1 = vld [vmem:[#allocation5] sm:$0xff]   ;;  %v166_v2 = vld [vmem:[#allocation5 + $0x8] sm:$0xff]  }
  0x27   :  { %148 = vmatprep.subr.bf16.mxu0 %v244_v0  ;;  %152 = vmatprep.mubr.msk.bf16.mxu0 %vm245_vm0, %v244_v0  ;;  %v167_v3 = vld [vmem:[#allocation2] sm:$0xff]   ;;  %vm74_vm1 = vcmask 261120   ;;  %s246_s1 = smov [#allocation7]   ;;  %vm119_vm2 = vcmask 523264  }
  0x28   :  { %149 = vmatpush3.bf16.msra.mxu0 %v165_v1  ;;  %v140_v4 = vld [vmem:[%s310_s2] ss:$0 sm:$0xff]  ;;  %s127_s12 = sshll.u32 %s246_s1, 4  ;;  %s128_s12 = int_to_ptr.vmem [resolvable:$true] %s127_s12 }
  0x29   :  { %150 = vmatprep.subr.bf16.mxu0 %v244_v0  ;;  %s212_s13 = scalar_lea.vmem %s128_s12, 256  ;;  %p217_p3 = scmp.lt.s32.totalorder %s128_s12, %s128_s12 }
  0x2a   :  { %p213_p2 = scmp.ne.s32.totalorder %s128_s12, %s212_s13  ;;  %p218_p4 = scmp.lt.s32.totalorder %s212_s13, %s212_s13 }
  0x2c   :  { %151 = vmatpush3.bf16.msra.mxu0 %v166_v2  ;;  %p219_p5 = por %p218_p4, %p217_p3 }
  0x2e   :  { %p220_p6 = pnand %p219_p5, %p213_p2 }
  0x2f   :  { %153 = vmatmul.mubr.msk.bf16.vlgmr.msra.gmra.mrb[0].mxu0 %vm74_vm1, %v167_v3 }
 0x102   :  { %v112_v5 = vpop.f32.mrb[0].mxu0 }
 0x103   :  { %v113_v6 = vadd.f32 %v140_v4, %v112_v5  ;;  %v154_v7 = vpop.f32.mrb[1].mxu0 }
 0x104   :  { %v115_v8 = vpop.f32.mrb[2].mxu0 }
 0x105   :  { %120 = vst.msk [vmem:[#allocation7] sm:$0xff] %vm119_vm2, %v113_v6  ;;  %v116_v9 = vadd.f32 %v140_v4, %v115_v8  ;;  %v155_v10 = vpop.f32.mrb[3].mxu0 }
 0x107   :  { %121 = vst.msk [vmem:[#allocation7 + $0x8] sm:$0xff] %vm119_vm2, %v116_v9 }
 0x108   :  { %223 = shalt.err (!%p220_p6)
}
 0x109   :  { %s224_s15 = scalar_lea.hbm %s311_s3, 256 }
 0x10a   :  { %p225_p7 = scmp.ne.s32.totalorder %s311_s3, %s224_s15  ;;  %p228_p8 = scmp.lt.u32.totalorder %s224_s15, %s311_s3 }
 0x10c   :  { %p230_p9 = pnand %p228_p8, %p225_p7 }
 0x10e   :  { %233 = shalt.err (!%p230_p9)
}
 0x10f   :  { %s247_s20 = smov 128   ;;  %s248_s21 = smov 8  }
 0x110   :  { %133 = dma.vmem_to_hbm [thread:$0]  %s128_s12, 256, %s311_s3, [#allocation4], %s247_s20, %s247_s20, %s248_s21  }
 0x111   :  { %238 = dma.done.wait [#allocation4], 256  }
 0x112   :  { %239 = vsyncadd [#allocation4], 4294967040 }
 0x113   :  { %137 = vsyncpa [#allocation3], 1 }
 0x114   :  { %138 = vsyncpa [#allocation6], 1 }
 0x115   :  { %139 = vsyncpa [#allocation4], 1 }

</bundles_post_ra>
